<compile_context>
chip_gen: v7x
topology: tpu7x:2x2x1
jax: 0.10.0
libtpu: 0.0.40
codegen_flags: <defaults>
</compile_context>

<pallas_src>
import jax
import jax.numpy as jnp
from jax.experimental import pallas as pl
from jax.experimental.pallas import tpu as pltpu


def _round_up(x, m):
    return ((x + m - 1) // m) * m


def roi_pool_kernel(mask_ref, feat_ref, out_ref):
    """One (split s, voxel-tile k) grid step.

    mask_ref : (R, TN)     bf16 {0,1} ROI one-hot tile
    feat_ref : (BC, TN)    bf16 feature tile, BC = B*C (batch folded in)
    out_ref  : (1, R, BC)  f32 partial num for this split (resident across k)
    """
    k = pl.program_id(1)

    @pl.when(k == 0)
    def _init():
        out_ref[...] = jnp.zeros_like(out_ref)

    # num[r, bc] += sum_n mask[r, n] * feat[bc, n]
    # Both operands contract on the lane (minor) dim — the MXU handles the
    # transposed RHS natively (same pattern as flash-attention q @ k.T);
    # bf16 operands, f32 accumulation.
    out_ref[0] += jax.lax.dot_general(
        mask_ref[...], feat_ref[...],
        (((1,), (1,)), ((), ())),
        preferred_element_type=jnp.float32)


def roi_pooling_3d(feat, onehot, *, tile_n=32768, num_splits=2):
    """ROIPooling3D.forward: feat (B,C,D',H',W'), onehot (R,D,H,W) -> (B,R,C)."""
    R, D, H, W = onehot.shape
    B, C = feat.shape[:2]
    Dp, Hp, Wp = feat.shape[2:]
    assert Dp >= D and Hp >= H and Wp >= W
    assert num_splits >= 1
    BC = B * C
    N = Dp * Hp * Wp

    # den depends only on the mask: compute the R voxel counts once, in f32.
    den = jnp.maximum(jnp.sum(onehot.reshape(R, -1), axis=1), 1e-6)   # (R,)

    # Zero-pad the mask to the *padded* feature geometry instead of cropping
    # the features; pad voxels carry mask 0 so they contribute nothing.
    mask = jnp.pad(onehot, ((0, 0), (0, Dp - D), (0, Hp - H), (0, Wp - W)))
    mask_flat = mask.reshape(R, N).astype(jnp.bfloat16)    # 0/1 exact in bf16

    # Fold the batch into the matmul N dimension: a contiguous reshape + bf16
    # cast is the only wrapper-side materialization of the feature map.
    feat_flat = feat.reshape(BC, N).astype(jnp.bfloat16)

    # Tile the voxel (reduction) axis; keep it last in the grid.
    assert tile_n % 128 == 0
    tn = min(tile_n, _round_up(pl.cdiv(N, num_splits), 128))
    chunk = tn * num_splits
    n_pad = _round_up(N, chunk)
    if n_pad != N:                  # zero voxels: add 0 to num (and den is fixed)
        mask_flat = jnp.pad(mask_flat, ((0, 0), (0, n_pad - N)))
        feat_flat = jnp.pad(feat_flat, ((0, 0), (0, n_pad - N)))
    steps = n_pad // chunk
    grid = (num_splits, steps)

    num_partial = pl.pallas_call(
        roi_pool_kernel,
        out_shape=jax.ShapeDtypeStruct((num_splits, R, BC), jnp.float32),
        grid=grid,
        in_specs=[
            pl.BlockSpec((R, tn), lambda s, k: (0, s * steps + k)),    # mask
            pl.BlockSpec((BC, tn), lambda s, k: (0, s * steps + k)),   # feat
        ],
        out_specs=pl.BlockSpec((1, R, BC), lambda s, k: (s, 0, 0)),
        compiler_params=pltpu.CompilerParams(
            dimension_semantics=("parallel", "arbitrary"),
            vmem_limit_bytes=48 * 1024 * 1024),
    )(mask_flat, feat_flat)

    num = jnp.sum(num_partial, axis=0)                     # (R, BC)
    out = num.reshape(R, B, C) / den[:, None, None]        # (R, B, C)
    return jnp.transpose(out, (1, 0, 2))                   # (B, R, C)


if __name__ == "__main__":
    # Small but structurally faithful shapes (real module: C=64, DHW=(96,112,96)).
    B, C = 2, 64
    D, H, W = 16, 16, 16
    roi_lo, roi_hi = 1, 94                  # AAL 1..94 -> R = 94
    R = roi_hi - roi_lo + 1

    key = jax.random.PRNGKey(0)
    k_atlas, k_feat = jax.random.split(key)

    # TODO(synk): real model loads the AAL atlas via nibabel; a synthetic random
    # integer atlas stands in here (one-hot built in plain JAX, as in __init__).
    atlas = jax.random.randint(k_atlas, (D, H, W), 0, roi_hi + 1, dtype=jnp.int32)
    onehot = jax.nn.one_hot(atlas, roi_hi + 1, dtype=jnp.float32)[..., roi_lo:roi_hi + 1]
    onehot = jnp.transpose(onehot, (3, 0, 1, 2))            # (R, D, H, W)

    # Padded decoder feature map (slightly larger than atlas DHW, as in the module).
    feat = jax.random.normal(k_feat, (B, C, D + 2, H + 2, W + 2), dtype=jnp.float32)

    # Small tile -> exercises both the split axis and the multi-step reduction.
    out = roi_pooling_3d(feat, onehot, tile_n=1024, num_splits=2)
    out = jax.block_until_ready(out)

    # Pure-JAX reference of ROIPooling3D.forward.
    feat_c = feat[..., :D, :H, :W].reshape(B, C, -1)
    mask = onehot.reshape(R, -1)
    num = jnp.einsum('rn,bcn->brc', mask, feat_c,
                     precision=jax.lax.Precision.HIGHEST)
    den = jnp.maximum(mask.sum(axis=1), 1e-6)
    ref = num / den[None, :, None]

    assert out.shape == (B, R, C)
    assert jnp.allclose(out, ref, atol=1e-2, rtol=1e-2), (
        float(jnp.max(jnp.abs(out - ref))))
    print("KERNEL_OK")
</pallas_src>

<mosaic_0001>
module attributes {stable_mosaic.version = 11 : i64} {
  func.func @roi_pool_kernel(%arg0: i32, %arg1: i32, %arg2: memref<94x1024xbf16, #tpu.memory_space<vmem>>, %arg3: memref<128x1024xbf16, #tpu.memory_space<vmem>>, %arg4: memref<1x94x128xf32, #tpu.memory_space<vmem>>) attributes {dimension_semantics = [#tpu.dimension_semantics<parallel>, #tpu.dimension_semantics<arbitrary>], iteration_bounds = array<i64: 2, 3>, scalar_prefetch = 0 : i64, scratch_operands = 0 : i64, tpu.core_type = #tpu.core_type<tc>, window_params = [{transform_indices = @transform_0, window_bounds = array<i64: 94, 1024>}, {transform_indices = @transform_1, window_bounds = array<i64: 128, 1024>}, {transform_indices = @transform_2, window_bounds = array<i64: 1, 94, 128>}]} {
    %c0_i32 = arith.constant 0 : i32
    %0 = arith.cmpi eq, %arg1, %c0_i32 : i32
    %1 = arith.extui %0 : i1 to i32
    %c0_i32_0 = arith.constant 0 : i32
    %2 = arith.cmpi ne, %1, %c0_i32_0 : i32
    scf.if %2 {
      %cst_10 = arith.constant 0.000000e+00 : f32
      %12 = vector.broadcast %cst_10 : f32 to vector<1x94x128xf32>
      %c0_11 = arith.constant 0 : index
      %c0_12 = arith.constant 0 : index
      %c0_13 = arith.constant 0 : index
      %13 = vector.load %arg4[%c0_11, %c0_12, %c0_13] : memref<1x94x128xf32, #tpu.memory_space<vmem>>, vector<1x94x128xf32>
      tpu.vector_store %arg4[%c0_11, %c0_12, %c0_13], %12 {strides = array<i32>} : memref<1x94x128xf32, #tpu.memory_space<vmem>>, vector<1x94x128xf32>,
    } else {
    }
    %c0 = arith.constant 0 : index
    %c0_1 = arith.constant 0 : index
    %c0_2 = arith.constant 0 : index
    %3 = vector.load %arg4[%c0, %c0_1, %c0_2] : memref<1x94x128xf32, #tpu.memory_space<vmem>>, vector<1x94x128xf32>
    %4 = vector.shape_cast %3 : vector<1x94x128xf32> to vector<94x128xf32>
    %c0_3 = arith.constant 0 : index
    %c0_4 = arith.constant 0 : index
    %5 = vector.load %arg2[%c0_3, %c0_4] : memref<94x1024xbf16, #tpu.memory_space<vmem>>, vector<94x1024xbf16>
    %c0_5 = arith.constant 0 : index
    %c0_6 = arith.constant 0 : index
    %6 = vector.load %arg3[%c0_5, %c0_6] : memref<128x1024xbf16, #tpu.memory_space<vmem>>, vector<128x1024xbf16>
    %cst = arith.constant dense<0.000000e+00> : vector<94x128xf32>
    %7 = tpu.matmul %5, %6, %cst {dimension_numbers = #tpu.dot_dimension_numbers<[1], [1], [0], [0], [0, 0, 1, 0], [], []>} : vector<94x1024xbf16>, vector<128x1024xbf16>, vector<94x128xf32> -> vector<94x128xf32>
    %8 = arith.addf %4, %7 : vector<94x128xf32>
    %c0_7 = arith.constant 0 : index
    %c0_8 = arith.constant 0 : index
    %c0_9 = arith.constant 0 : index
    %9 = vector.load %arg4[%c0_7, %c0_8, %c0_9] : memref<1x94x128xf32, #tpu.memory_space<vmem>>, vector<1x94x128xf32>
    %10 = vector.shape_cast %9 : vector<1x94x128xf32> to vector<94x128xf32>
    %11 = vector.shape_cast %8 : vector<94x128xf32> to vector<1x94x128xf32>
    tpu.vector_store %arg4[%c0_7, %c0_8, %c0_9], %11 {strides = array<i32>} : memref<1x94x128xf32, #tpu.memory_space<vmem>>, vector<1x94x128xf32>,
    return
  }
  func.func @transform_0(%arg0: i32, %arg1: i32) -> (i32, i32) {
    %c3_i32 = arith.constant 3 : i32
    %0 = arith.muli %arg0, %c3_i32 : i32
    %1 = arith.addi %0, %arg1 : i32
    %c0_i32 = arith.constant 0 : i32
    %c0_i32_0 = arith.constant 0 : i32
    return %c0_i32, %1 : i32, i32
  }
  func.func @transform_1(%arg0: i32, %arg1: i32) -> (i32, i32) {
    %c3_i32 = arith.constant 3 : i32
    %0 = arith.muli %arg0, %c3_i32 : i32
    %1 = arith.addi %0, %arg1 : i32
    %c0_i32 = arith.constant 0 : i32
    %c0_i32_0 = arith.constant 0 : i32
    return %c0_i32, %1 : i32, i32
  }
  func.func @transform_2(%arg0: i32, %arg1: i32) -> (i32, i32, i32) {
    %c0_i32 = arith.constant 0 : i32
    %c0_i32_0 = arith.constant 0 : i32
    %c0_i32_1 = arith.constant 0 : i32
    return %arg0, %c0_i32, %c0_i32_0 : i32, i32, i32
  }
}

</mosaic_0001>

<bundles_post_ra>
// kernel: tpu_custom_call.1
= control target key start
LH: loop header
LB: loop body
LE: loop exit
PB: predicated region body
PF: predicated region fallthrough
CT: control target
= control target key end

     0   :  { %7 = vsyncpa [#allocation3], 0  ;;  %s2162_s0 = inlined_call_operand.hbm [shape: bf16[94,6144], index: 0, kind: input, shape index: {}]   ;;  %s2163_s1 = inlined_call_operand.hbm [shape: bf16[128,6144], index: 1, kind: input, shape index: {}]   ;;  %s2164_s2 = inlined_call_operand.vmem [shape: f32[2,94,128], index: 2, kind: output, shape index: {}]  }
   0x1   :  { %9 = vsyncpa [#allocation3 + $0x1], 0 }
   0x2   :  { %10 = vsyncpa [#allocation5], 0 }
   0x3   :  { %12 = vsyncpa [#allocation5 + $0x1], 0  ;;  %s1753_s9 = smov 0   ;;  %s1755_s10 = smov 0  }
   0x4   :  { %s1757_s11 = smov 0   ;;  %s1759_s12 = smov 0  }
   0x5   :  { %s1761_s13 = smov 0   ;;  %s1763_s14 = smov 0  }
   0x6   :  { %s1765_s15 = smov 0   ;;  %s1767_s16 = smov 0  }
   0x7 LB: > { %s1388_s17 = sadd.s32 4294967295, %s1730_s16   ;;  %s27_s18 = sadd.s32 1, %s1722_s14  ;;  %s1730_s16 = sphi %s1767_s16, %s18_s16   ;;  %s1726_s15 = sphi %s1765_s15, %s2178_s15   ;;  %s1722_s14 = sphi %s1763_s14, %s2177_s14   ;;  %s1718_s13 = sphi %s1761_s13, %s2176_s13   ;;  %s1714_s12 = sphi %s1759_s12, %s2175_s12   ;;  %s1710_s11 = sphi %s1757_s11, %s2174_s11   ;;  %s1706_s10 = sphi %s1755_s10, %s2173_s10   ;;  %s1702_s9 = sphi %s1753_s9, %s2172_s9  }
   0x8   : > { %p28_p0 = scmp.ge.s32.totalorder %s27_s18, 3  ;;  %s30_s19 = sadd.s32 1, %s1726_s15 }
   0x9   : > { %s34_s20 = smul.u32 3, %s1726_s15  ;;  %s41_s21 = sadd.s32 1, %s1710_s11 }
   0xa   : > { %s2180_s18 = smov (%p28_p0, %s27_s18), 0  ;;  %s2182_s19 = smov (!%p28_p0, %s30_s19), %s1726_s15 }
   0xb   : > { %s1800_s22 = sadd.s32 %s1722_s14, %s34_s20  ;;  %p48_p1 = scmp.ne.s32.totalorder %s1710_s11, %s1706_s10 }
   0xc   : > { %p32_p2 = scmp.ge.s32.totalorder %s2182_s19, 2  ;;  %p49_p3 = scmp.eq.s32.totalorder %s1730_s16, 0 }
   0xd   : > { %p54_p4 = scmp.ne.s32.totalorder %s1706_s10, %s1702_s9  ;;  %p55_p5 = scmp.eq.s32.totalorder %s1388_s17, 0 }
   0xe   : > { %s2184_s19 = smov (%p32_p2, %s2182_s19), 0  ;;  %p1808_p6 = por %p49_p3, %p48_p1 }
   0xf   : > { %p1812_p7 = por %p55_p5, %p54_p4  ;;  %s36_s25 = smul.u32 3, %s2184_s19 }
  0x10   : > { %p1531_p8 = scmp.lt.s32.totalorder %s1730_s16, 6  ;;  %s1819_s26 = sand.u32 1, %s1710_s11  }
  0x11   : > { %s2167_s24 = scalar_select %p1812_p7, 1, 0 }
  0x12   : > { %s37_s27 = sadd.s32 %s36_s25, %s2180_s18  ;;  %s1517_s29 = smul.u32 384, %s1819_s26 }
  0x13   : > { %s38_s28 = ssub.s32 %s1800_s22, %s37_s27  ;;  %s1515_s30 = sshll.u32 %s1800_s22, 9 }
  0x14   : > { %p39_p9 = scmp.eq.s32.totalorder %s38_s28, 0  ;;  %s1830_s5 = scalar_lea.hbm %s2162_s0, %s1515_s30 }
  0x15   : > { %s138_s7 = scalar_lea.vmem [#allocation2], %s1517_s29  ;;  %p1837_p10 = pnand %p1531_p8, %p1808_p6 }
  0x16   : > { %s1833_s6 = scalar_select %p39_p9, %s1710_s11, %s41_s21  }
  0x17   : > { %s147_s8 = sshll.u32 %s138_s7, 4  ;;  %s135_s17 = scalar_lea.sflag [#allocation3], %s1819_s26  ;;  %s1841_s8 = int_to_ptr.vmem [resolvable:$true] %s147_s8 }
  0x18   : > { %s1600_s20 = scalar_lea.hbm %s1830_s5, 6144  ;;  %p1602_p13 = pneg %p1837_p10 }
  0x19   : > { %p1601_p12 = scmp.ne.s32.totalorder %s1830_s5, %s1600_s20  ;;  %s1605_s25 = scalar_lea.hbm %s2162_s0, 36864 }
  0x1a   : > { %p1606_p2 = scmp.lt.u32.totalorder %s1830_s5, %s2162_s0  ;;  %p1607_p3 = scmp.lt.u32.totalorder %s1605_s25, %s1600_s20 }
  0x1b   : > { %p1603_p0 = pnand %p1602_p13, %p1601_p12  ;;  %p1609_p5 = scmp.lt.u32.totalorder %s1600_s20, %s1830_s5 }
  0x1c   : > { %p1608_p4 = por %p1607_p3, %p1606_p2 }
  0x1d   : > { %p1604_p1 = pneg %p1603_p0 }
  0x1e   : > { %p1610_p6 = por %p1609_p5, %p1608_p4 }
  0x20   : > { %p1611_p8 = pnand %p1610_p6, %p1604_p1 }
  0x22   : > { %1614 = shalt.err (!%p1611_p8)
}
  0x23   : > { %s1615_s29 = scalar_lea.vmem %s1841_s8, 6144  ;;  %s1732_s3 = smov [#allocation2]  }
  0x24   : > { %p1616_p9 = scmp.ne.s32.totalorder %s1841_s8, %s1615_s29  ;;  %s1620_s4 = sshll.u32 %s1732_s3, 4  ;;  %s1621_s4 = int_to_ptr.vmem [resolvable:$false] %s1620_s4 }
  0x25   : > { %s1622_s7 = scalar_lea.vmem %s1621_s4, 12288  ;;  %p1623_p11 = scmp.lt.s32.totalorder %s1841_s8, %s1621_s4 }
  0x26   : > { %p1618_p12 = pnand %p1616_p9, %p1602_p13  ;;  %p1624_p2 = scmp.lt.s32.totalorder %s1622_s7, %s1615_s29 }
  0x28   : > { %p1619_p0 = pneg %p1618_p12  ;;  %p1625_p3 = por %p1624_p2, %p1623_p11 }
  0x2a   : > { %p1626_p4 = pnand %p1625_p3, %p1619_p0 }
  0x2c   : > { %1629 = shalt.err (!%p1626_p4)
}
  0x2d   : > { %s1733_s20 = smov 3072   ;;  %s1734_s21 = smov 512  }
  0x2e   : > { %s1735_s23 = smov 32   ;;  %p178_p11 = scmp.lt.s32.totalorder %s1730_s16, 7 }
  0x2f   : > { %1527 = dma.hbm_to_vmem [thread:$0]  (!%p1837_p10), %s1830_s5, 6144, %s1841_s8, %s135_s17, %s1733_s20, %s1734_s21, %s1735_s23  }
  0x30   : > { %s1394_s25 = sshll.u32 %s1819_s26, 9  ;;  %s1882_s29 = scalar_lea.hbm %s2163_s1, %s1515_s30 }
  0x31   : > { %p2169_p1 = scmp.ge.s32.totalorder %s1730_s16, 1  ;;  %s161_s4 = scalar_lea.vmem [#allocation4], %s1394_s25 }
  0x32   : > { %s170_s7 = sshll.u32 %s161_s4, 4  ;;  %s158_s5 = scalar_lea.sflag [#allocation5], %s1819_s26  ;;  %s1890_s7 = int_to_ptr.vmem [resolvable:$true] %s170_s7 }
  0x33   : > { %p1886_p5 = pnand %p2169_p1, %p178_p11  ;;  %s1630_s22 = scalar_lea.hbm %s1882_s29, 8192 }
  0x34   : > { %p1631_p6 = scmp.ne.s32.totalorder %s1882_s29, %s1630_s22  ;;  %s1635_s17 = scalar_lea.hbm %s2163_s1, 49152 }
  0x35   : > { %p1636_p12 = scmp.lt.u32.totalorder %s1882_s29, %s2163_s1  ;;  %p1637_p0 = scmp.lt.u32.totalorder %s1635_s17, %s1630_s22 }
  0x36   : > { %p1633_p8 = pnand %p1631_p6, %p1602_p13  ;;  %p1639_p3 = scmp.lt.u32.totalorder %s1630_s22, %s1882_s29 }
  0x37   : > { %p1638_p2 = por %p1637_p0, %p1636_p12 }
  0x38   : > { %p1634_p9 = pneg %p1633_p8 }
  0x39   : > { %p1640_p4 = por %p1639_p3, %p1638_p2 }
  0x3b   : > { %p1641_p11 = pnand %p1640_p4, %p1634_p9 }
  0x3d   : > { %1644 = shalt.err (!%p1641_p11)
}
  0x3e   : > { %s1645_s25 = scalar_lea.vmem %s1890_s7, 8192  ;;  %s1736_s4 = smov [#allocation4]  }
  0x3f   : > { %p1646_p1 = scmp.ne.s32.totalorder %s1890_s7, %s1645_s25  ;;  %s1650_s30 = sshll.u32 %s1736_s4, 4  ;;  %s1651_s30 = int_to_ptr.vmem [resolvable:$false] %s1650_s30 }
  0x40   : > { %s1652_s8 = scalar_lea.vmem %s1651_s30, 16384  ;;  %p1653_p7 = scmp.lt.s32.totalorder %s1890_s7, %s1651_s30 }
  0x41   : > { %p1648_p6 = pnand %p1646_p1, %p1602_p13  ;;  %p1654_p12 = scmp.lt.s32.totalorder %s1652_s8, %s1645_s25 }
  0x43   : > { %p1649_p8 = pneg %p1648_p6  ;;  %p1655_p0 = por %p1654_p12, %p1653_p7 }
  0x45   : > { %p1656_p2 = pnand %p1655_p0, %p1649_p8 }
  0x47   : > { %1659 = shalt.err (!%p1656_p2)
}
  0x48   : > { %1530 = dma.hbm_to_vmem [thread:$0]  (!%p1837_p10), %s1882_s29, 8192, %s1890_s7, %s158_s5, %s1733_s20, %s1734_s21, %s1735_s23  }
  0x49   : > { %182 = sbr.rel (%p1886_p5) target bundleno = 489 (0x1e9), region = 28  ;;  %s184_s22 = sand.u32 (!%p1886_p5), 1, %s1706_s10  }
  0x4a   : > { %s1518_s17 = smul.u32 (!%p1886_p5), 384, %s184_s22  ;;  %s185_s27 = scalar_lea.sflag (!%p1886_p5), [#allocation3], %s184_s22 }
  0x4b   : > { %p2171_p7 = scmp.ne.s32.totalorder (!%p1886_p5), %s2167_s24, 0 }
  0x4c   : > { %s1924_s28 = scalar_lea.vmem (!%p1886_p5), [#allocation2], %s1518_s17 }
  0x50   : > { %1693 = dma.done.wait (%p2171_p7), %s185_s27, 6144  }
  0x51   : > { %1695 = vsyncadd (%p2171_p7), %s185_s27, 4294961152  ;;  %s1398_s26 = sshll.u32 %s184_s22, 9  ;;  %s194_s9 = scalar_lea.sflag [#allocation5], %s184_s22 }
  0x52   : > { %s1930_s25 = scalar_lea.vmem [#allocation4], %s1398_s26 }
  0x53   : > { %1697 = dma.done.wait (%p2171_p7), %s194_s9, 8192  }
  0x54   : > { %1699 = vsyncadd (%p2171_p7), %s194_s9, 4294959104  ;;  %p229_p10 = scmp.lt.s32.totalorder %s1718_s13, 1  ;;  %p1400_p13 = scmp.ne.s32.totalorder %s1714_s12, 0 }
  0x55   : > { %v1737_v0 = vmov (!%p1400_p13), 0.0  }
  0x56   : > { %s2186_s13 = smov (!%p229_p10, %s1718_s13), 1  ;;  %238 = sbr.rel (%p1400_p13) target bundleno = 96 (0x60), region = 40 }
  0x57   : > { %s1519_s20 = smul.u32 96, %s2186_s13 }
  0x59   : > { %s1941_s29 = scalar_lea.vmem %s2164_s2, %s1519_s20 }
  0x5a   : > { %239 = vst [vmem:[%s1941_s29] sm:$0xff] (!%p1400_p13), %v1737_v0  ;;  %240 = vst [vmem:[%s1941_s29 + $0x8] sm:$0xff] (!%p1400_p13), %v1737_v0 }
  0x5b   : > { %241 = vst [vmem:[%s1941_s29 + $0x10] sm:$0xff] (!%p1400_p13), %v1737_v0  ;;  %242 = vst [vmem:[%s1941_s29 + $0x18] sm:$0xff] (!%p1400_p13), %v1737_v0 }
  0x5c   : > { %243 = vst [vmem:[%s1941_s29 + $0x20] sm:$0xff] (!%p1400_p13), %v1737_v0  ;;  %244 = vst [vmem:[%s1941_s29 + $0x28] sm:$0xff] (!%p1400_p13), %v1737_v0 }
  0x5d   : > { %245 = vst [vmem:[%s1941_s29 + $0x30] sm:$0xff] %v1737_v0  ;;  %246 = vst [vmem:[%s1941_s29 + $0x38] sm:$0xff] %v1737_v0 }
  0x5e   : > { %247 = vst [vmem:[%s1941_s29 + $0x40] sm:$0xff] %v1737_v0  ;;  %248 = vst [vmem:[%s1941_s29 + $0x48] sm:$0xff] %v1737_v0 }
  0x5f   : > { %249 = vst [vmem:[%s1941_s29 + $0x50] sm:$0xff] %v1737_v0  ;;  %250 = vst [vmem:[%s1941_s29 + $0x58] sm:$0x3f] %v1737_v0 }
  0x60 PF: > { %v311_v1 = vld [vmem:[%s1930_s25] sm:$0xff]  ;;  %v312_v3 = vld [vmem:[%s1930_s25 + $0x8] sm:$0xff] }
  0x61   : > { %v315_v2 = vld [vmem:[%s1930_s25 + $0x20] sm:$0xff]  ;;  %v316_v5 = vld [vmem:[%s1930_s25 + $0x28] sm:$0xff] }
  0x62   : > { %v1450_v4 = vcombine.high %v311_v1, %v315_v2  ;;  %v1449_v6 = vcombine.low %v311_v1, %v315_v2  ;;  %v319_v7 = vld [vmem:[%s1930_s25 + $0x40] sm:$0xff]  ;;  %v1452_v9 = vcombine.high %v312_v3, %v316_v5  ;;  %v1451_v10 = vcombine.low %v312_v3, %v316_v5  ;;  %v320_v12 = vld [vmem:[%s1930_s25 + $0x48] sm:$0xff]  ;;  %v313_v5 = vld [vmem:[%s1930_s25 + $0x10] sm:$0xff] }
  0x63   : > { %v323_v8 = vld [vmem:[%s1930_s25 + $0x60] sm:$0xff]  ;;  %v324_v13 = vld [vmem:[%s1930_s25 + $0x68] sm:$0xff] }
  0x64   : > { %v1458_v11 = vcombine.high %v319_v7, %v323_v8  ;;  %935 = vmatprep.subr.bf16.mxu0 %v1450_v4  ;;  %v1460_v14 = vcombine.high %v320_v12, %v324_v13  ;;  %1016 = vmatprep.subr.bf16.mxu1 %v1452_v9  ;;  %v327_v15 = vld [vmem:[%s1930_s25 + $0x80] sm:$0xff]  ;;  %v328_v17 = vld [vmem:[%s1930_s25 + $0x88] sm:$0xff]  ;;  %v1457_v19 = vcombine.low %v319_v7, %v323_v8  ;;  %v314_v7 = vld [vmem:[%s1930_s25 + $0x18] sm:$0xff] }
  0x65   : > { %936 = vmatpush1.bf16.xpose.msra.mxu0 %v1449_v6  ;;  %1017 = vmatpush1.bf16.xpose.msra.mxu1 %v1451_v10  ;;  %v331_v16 = vld [vmem:[%s1930_s25 + $0xa0] sm:$0xff]  ;;  %v332_v18 = vld [vmem:[%s1930_s25 + $0xa8] sm:$0xff]  ;;  %v1459_v20 = vcombine.low %v320_v12, %v324_v13  ;;  %v317_v6 = vld [vmem:[%s1930_s25 + $0x30] sm:$0xff] }
  0x66   : > { %937 = vmatprep.subr.bf16.mxu0 %v1458_v11  ;;  %1018 = vmatprep.subr.bf16.mxu1 %v1460_v14  ;;  %v1466_v21 = vcombine.high %v327_v15, %v331_v16  ;;  %v1468_v22 = vcombine.high %v328_v17, %v332_v18  ;;  %v1969_v23 = vld [vmem:[%s1924_s28] sm:$0xff]  ;;  %v1975_v25 = vld [vmem:[%s1924_s28 + $0x8] sm:$0xff]  ;;  %v1465_v33 = vcombine.low %v327_v15, %v331_v16  ;;  %v318_v8 = vld [vmem:[%s1930_s25 + $0x38] sm:$0xff] }
  0x67   : > { %v1972_v24 = vld [vmem:[%s1924_s28 + $0x20] sm:$0xff]  ;;  %v1978_v26 = vld [vmem:[%s1924_s28 + $0x28] sm:$0xff]  ;;  %v1467_v34 = vcombine.low %v328_v17, %v332_v18  ;;  %v1454_v11 = vcombine.high %v313_v5, %v317_v6  ;;  %v1456_v12 = vcombine.high %v314_v7, %v318_v8  ;;  %v321_v13 = vld [vmem:[%s1930_s25 + $0x50] sm:$0xff] }
  0x68   : > { %v1402_v27 = vcombine.high %v1969_v23, %v1972_v24  ;;  %v1404_v28 = vcombine.high %v1975_v25, %v1978_v26  ;;  %v335_v29 = vld [vmem:[%s1930_s25 + $0xc0] sm:$0xff]  ;;  %v336_v31 = vld [vmem:[%s1930_s25 + $0xc8] sm:$0xff]  ;;  %v325_v14 = vld [vmem:[%s1930_s25 + $0x70] sm:$0xff]  ;;  %v1401_v16 = vcombine.low %v1969_v23, %v1972_v24 }
  0x69   : > { %v339_v30 = vld [vmem:[%s1930_s25 + $0xe0] sm:$0xff]  ;;  %v340_v32 = vld [vmem:[%s1930_s25 + $0xe8] sm:$0xff]  ;;  %v322_v15 = vld [vmem:[%s1930_s25 + $0x58] sm:$0xff] }
  0x6a   : > { %967 = vmatprep.mubr.bf16.mxu0 %v1402_v27  ;;  %1048 = vmatprep.mubr.bf16.mxu1 %v1404_v28  ;;  %v1474_v35 = vcombine.high %v335_v29, %v339_v30  ;;  %v1476_v36 = vcombine.high %v336_v31, %v340_v32  ;;  %v343_v37 = vld [vmem:[%s1930_s25 + $0x100] sm:$0xff]  ;;  %v344_v39 = vld [vmem:[%s1930_s25 + $0x108] sm:$0xff]  ;;  %v1473_v41 = vcombine.low %v335_v29, %v339_v30  ;;  %v326_v17 = vld [vmem:[%s1930_s25 + $0x78] sm:$0xff] }
  0x6b   : > { %v347_v38 = vld [vmem:[%s1930_s25 + $0x120] sm:$0xff]  ;;  %v348_v40 = vld [vmem:[%s1930_s25 + $0x128] sm:$0xff]  ;;  %v1475_v42 = vcombine.low %v336_v31, %v340_v32  ;;  %v1455_v28 = vcombine.low %v314_v7, %v318_v8  ;;  %v1462_v29 = vcombine.high %v321_v13, %v325_v14  ;;  %v1464_v30 = vcombine.high %v322_v15, %v326_v17  ;;  %v329_v24 = vld [vmem:[%s1930_s25 + $0x90] sm:$0xff] }
  0x6c   : > { %v1482_v43 = vcombine.high %v343_v37, %v347_v38  ;;  %v1484_v44 = vcombine.high %v344_v39, %v348_v40  ;;  %v351_v45 = vld [vmem:[%s1930_s25 + $0x140] sm:$0xff]  ;;  %v352_v47 = vld [vmem:[%s1930_s25 + $0x148] sm:$0xff]  ;;  %v1481_v49 = vcombine.low %v343_v37, %v347_v38  ;;  %v1483_v50 = vcombine.low %v344_v39, %v348_v40  ;;  %v334_v32 = vld [vmem:[%s1930_s25 + $0xb8] sm:$0xff] }
  0x6d   : > { %938 = vmatpush1.bf16.xpose.msra.mxu0 %v1457_v19  ;;  %1019 = vmatpush1.bf16.xpose.msra.mxu1 %v1459_v20  ;;  %v355_v46 = vld [vmem:[%s1930_s25 + $0x160] sm:$0xff]  ;;  %v356_v48 = vld [vmem:[%s1930_s25 + $0x168] sm:$0xff]  ;;  %v1403_v20 = vcombine.low %v1975_v25, %v1978_v26  ;;  %v333_v25 = vld [vmem:[%s1930_s25 + $0xb0] sm:$0xff]  ;;  %v1463_v40 = vcombine.low %v322_v15, %v326_v17 }
  0x6e   : > { %939 = vmatprep.subr.bf16.mxu0 %v1466_v21  ;;  %1020 = vmatprep.subr.bf16.mxu1 %v1468_v22  ;;  %v1490_v51 = vcombine.high %v351_v45, %v355_v46  ;;  %v1492_v52 = vcombine.high %v352_v47, %v356_v48  ;;  %v359_v53 = vld [vmem:[%s1930_s25 + $0x180] sm:$0xff]  ;;  %v360_v55 = vld [vmem:[%s1930_s25 + $0x188] sm:$0xff]  ;;  %v1489_v57 = vcombine.low %v351_v45, %v355_v46  ;;  %v330_v26 = vld [vmem:[%s1930_s25 + $0x98] sm:$0xff] }
  0x6f   : > { %v363_v54 = vld [vmem:[%s1930_s25 + $0x1a0] sm:$0xff]  ;;  %v364_v56 = vld [vmem:[%s1930_s25 + $0x1a8] sm:$0xff]  ;;  %v1491_v58 = vcombine.low %v352_v47, %v356_v48  ;;  %v1453_v21 = vcombine.low %v313_v5, %v317_v6  ;;  %v337_v45 = vld [vmem:[%s1930_s25 + $0xd0] sm:$0xff] }
  0x70   : > { %v1498_v59 = vcombine.high %v359_v53, %v363_v54  ;;  %v1500_v60 = vcombine.high %v360_v55, %v364_v56  ;;  %v367_v61 = vld [vmem:[%s1930_s25 + $0x1c0] sm:$0xff]  ;;  %v368_v63 = vld [vmem:[%s1930_s25 + $0x1c8] sm:$0xff]  ;;  %v1497_v1 = vcombine.low %v359_v53, %v363_v54  ;;  %v1499_v2 = vcombine.low %v360_v55, %v364_v56  ;;  %v341_v46 = vld [vmem:[%s1930_s25 + $0xf0] sm:$0xff] }
  0x71   : > { %v371_v62 = vld [vmem:[%s1930_s25 + $0x1e0] sm:$0xff]  ;;  %v372_v0 = vld [vmem:[%s1930_s25 + $0x1e8] sm:$0xff]  ;;  %v338_v47 = vld [vmem:[%s1930_s25 + $0xd8] sm:$0xff]  ;;  %v1471_v56 = vcombine.low %v330_v26, %v334_v32 }
  0x72   : > { %v1506_v3 = vcombine.high %v367_v61, %v371_v62  ;;  %v1508_v4 = vcombine.high %v368_v63, %v372_v0  ;;  %v1505_v9 = vcombine.low %v367_v61, %v371_v62  ;;  %v1507_v10 = vcombine.low %v368_v63, %v372_v0  ;;  %v271_v18 = vld [vmem:[%s1924_s28 + $0x40] sm:$0xff]  ;;  %v272_v22 = vld [vmem:[%s1924_s28 + $0x48] sm:$0xff]  ;;  %v342_v48 = vld [vmem:[%s1930_s25 + $0xf8] sm:$0xff] }
  0x73   : > { %v275_v19 = vld [vmem:[%s1924_s28 + $0x60] sm:$0xff]  ;;  %v276_v27 = vld [vmem:[%s1924_s28 + $0x68] sm:$0xff]  ;;  %v345_v61 = vld [vmem:[%s1930_s25 + $0x110] sm:$0xff]  ;;  %v1479_v8 = vcombine.low %v338_v47, %v342_v48 }
  0x74   : > { %v1410_v31 = vcombine.high %v271_v18, %v275_v19  ;;  %v1412_v23 = vcombine.high %v272_v22, %v276_v27  ;;  %v1411_v37 = vcombine.low %v272_v22, %v276_v27  ;;  %v280_v38 = vld [vmem:[%s1924_s28 + $0x88] sm:$0xff]  ;;  %v349_v62 = vld [vmem:[%s1930_s25 + $0x130] sm:$0xff]  ;;  %v346_v63 = vld [vmem:[%s1930_s25 + $0x118] sm:$0xff] }
  0x75   : > { %940 = vmatpush1.bf16.xpose.msra.mxu0 %v1465_v33  ;;  %1021 = vmatpush1.bf16.xpose.msra.mxu1 %v1467_v34  ;;  %v1409_v33 = vcombine.low %v271_v18, %v275_v19  ;;  %v279_v34 = vld [vmem:[%s1924_s28 + $0x80] sm:$0xff]  ;;  %v284_v39 = vld [vmem:[%s1924_s28 + $0xa8] sm:$0xff]  ;;  %v350_v0 = vld [vmem:[%s1930_s25 + $0x138] sm:$0xff] }
  0x76   : > { %941 = vmatprep.subr.bf16.mxu0 %v1474_v35  ;;  %1022 = vmatprep.subr.bf16.mxu1 %v1476_v36  ;;  %v283_v35 = vld [vmem:[%s1924_s28 + $0xa0] sm:$0xff]  ;;  %v1461_v36 = vcombine.low %v321_v13, %v325_v14  ;;  %v1419_v53 = vcombine.low %v280_v38, %v284_v39  ;;  %v288_v54 = vld [vmem:[%s1924_s28 + $0xc8] sm:$0xff]  ;;  %v353_v13 = vld [vmem:[%s1930_s25 + $0x150] sm:$0xff] }
  0x77   : > { %v292_v55 = vld [vmem:[%s1924_s28 + $0xe8] sm:$0xff]  ;;  %v357_v14 = vld [vmem:[%s1930_s25 + $0x170] sm:$0xff]  ;;  %v354_v15 = vld [vmem:[%s1930_s25 + $0x158] sm:$0xff] }
  0x78   : > { %v1427_v5 = vcombine.low %v288_v54, %v292_v55  ;;  %v296_v6 = vld [vmem:[%s1924_s28 + $0x108] sm:$0xff]  ;;  %v303_v18 = vld [vmem:[%s1924_s28 + $0x140] sm:$0xff] }
  0x79   : > { %v300_v7 = vld [vmem:[%s1924_s28 + $0x128] sm:$0xff]  ;;  %v307_v19 = vld [vmem:[%s1924_s28 + $0x160] sm:$0x77] }
  0x7a   : > { %v304_v22 = vld [vmem:[%s1924_s28 + $0x148] sm:$0xff] }
  0x7b   : > { %v308_v27 = vld [vmem:[%s1924_s28 + $0x168] sm:$0x77] }
  0x7d   : > { %942 = vmatpush1.bf16.xpose.msra.mxu0 %v1473_v41  ;;  %1023 = vmatpush1.bf16.xpose.msra.mxu1 %v1475_v42  ;;  %v1470_v41 = vcombine.high %v329_v24, %v333_v25  ;;  %v1472_v42 = vcombine.high %v330_v26, %v334_v32  ;;  %v362_v26 = vld [vmem:[%s1930_s25 + $0x198] sm:$0xff] }
  0x7e   : > { %943 = vmatprep.subr.bf16.mxu0 %v1482_v43  ;;  %1024 = vmatprep.subr.bf16.mxu1 %v1484_v44  ;;  %v1418_v43 = vcombine.high %v279_v34, %v283_v35  ;;  %v1420_v44 = vcombine.high %v280_v38, %v284_v39  ;;  %v366_v32 = vld [vmem:[%s1930_s25 + $0x1b8] sm:$0xff] }
  0x7f   : > { %v266_v38 = vld [vmem:[%s1924_s28 + $0x18] sm:$0xff] }
  0x80   : > { %v270_v39 = vld [vmem:[%s1924_s28 + $0x38] sm:$0xff] }
  0x85   : > { %944 = vmatpush1.bf16.xpose.msra.mxu0 %v1481_v49  ;;  %1025 = vmatpush1.bf16.xpose.msra.mxu1 %v1483_v50  ;;  %v1417_v49 = vcombine.low %v279_v34, %v283_v35  ;;  %v287_v50 = vld [vmem:[%s1924_s28 + $0xc0] sm:$0xff]  ;;  %v265_v34 = vld [vmem:[%s1924_s28 + $0x10] sm:$0xff] }
  0x86   : > { %945 = vmatprep.subr.bf16.mxu0 %v1490_v51  ;;  %1026 = vmatprep.subr.bf16.mxu1 %v1492_v52  ;;  %v291_v51 = vld [vmem:[%s1924_s28 + $0xe0] sm:$0xff]  ;;  %v1469_v52 = vcombine.low %v329_v24, %v333_v25  ;;  %v361_v24 = vld [vmem:[%s1930_s25 + $0x190] sm:$0xff] }
  0x87   : > { %v365_v25 = vld [vmem:[%s1930_s25 + $0x1b0] sm:$0xff] }
  0x88   : > { %v269_v35 = vld [vmem:[%s1924_s28 + $0x30] sm:$0xff] }
  0x8d   : > { %946 = vmatpush1.bf16.xpose.msra.mxu0 %v1489_v57  ;;  %1027 = vmatpush1.bf16.xpose.msra.mxu1 %v1491_v58  ;;  %v1478_v57 = vcombine.high %v337_v45, %v341_v46  ;;  %v1480_v58 = vcombine.high %v338_v47, %v342_v48  ;;  %v370_v47 = vld [vmem:[%s1930_s25 + $0x1d8] sm:$0xff] }
  0x8e   : > { %947 = vmatprep.subr.bf16.mxu0 %v1498_v59  ;;  %1028 = vmatprep.subr.bf16.mxu1 %v1500_v60  ;;  %v1426_v59 = vcombine.high %v287_v50, %v291_v51  ;;  %v1428_v60 = vcombine.high %v288_v54, %v292_v55  ;;  %v374_v48 = vld [vmem:[%s1930_s25 + $0x1f8] sm:$0xff]  ;;  %v273_v55 = vld [vmem:[%s1924_s28 + $0x50] sm:$0xff] }
  0x8f   : > { %v1511_v54 = vcombine.low %v370_v47, %v374_v48 }
  0x95   : > { %948 = vmatpush1.bf16.xpose.msra.mxu0 %v1497_v1  ;;  %1029 = vmatpush1.bf16.xpose.msra.mxu1 %v1499_v2  ;;  %v1425_v1 = vcombine.low %v287_v50, %v291_v51  ;;  %v295_v2 = vld [vmem:[%s1924_s28 + $0x100] sm:$0xff]  ;;  %v1503_v50 = vcombine.low %v362_v26, %v366_v32 }
  0x96   : > { %949 = vmatprep.subr.bf16.mxu0 %v1506_v3  ;;  %1030 = vmatprep.subr.bf16.mxu1 %v1508_v4  ;;  %v299_v3 = vld [vmem:[%s1924_s28 + $0x120] sm:$0xff]  ;;  %v1477_v4 = vcombine.low %v337_v45, %v341_v46  ;;  %v369_v45 = vld [vmem:[%s1930_s25 + $0x1d0] sm:$0xff] }
  0x97   : > { %v1433_v17 = vcombine.low %v295_v2, %v299_v3  ;;  %v373_v46 = vld [vmem:[%s1930_s25 + $0x1f0] sm:$0xff] }
  0x98   : > { %v1510_v51 = vcombine.high %v369_v45, %v373_v46 }
  0x9d   : > { %950 = vmatpush1.bf16.xpose.msra.mxu0 %v1505_v9  ;;  %1031 = vmatpush1.bf16.xpose.msra.mxu1 %v1507_v10  ;;  %v1486_v9 = vcombine.high %v345_v61, %v349_v62  ;;  %v1488_v10 = vcombine.high %v346_v63, %v350_v0 }
  0x9e   : > { %1097 = vmatprep.subr.bf16.mxu0 %v1454_v11  ;;  %1178 = vmatprep.subr.bf16.mxu1 %v1456_v12  ;;  %v1434_v11 = vcombine.high %v295_v2, %v299_v3  ;;  %v1436_v12 = vcombine.high %v296_v6, %v300_v7  ;;  %v286_v2 = vld [vmem:[%s1924_s28 + $0xb8] sm:$0xff] }
  0xa4   : > { %968 = vmatmul.mubr.bf16.vlgmr.msra.gmra.mrb[0].mxu0 %v1401_v16  ;;  %1049 = vmatmul.mubr.bf16.vlgmr.msra.gmra.mrb[0].mxu1 %v1403_v20  ;;  %v358_v16 = vld [vmem:[%s1930_s25 + $0x178] sm:$0xff]  ;;  %v1485_v20 = vcombine.low %v345_v61, %v349_v62 }
  0xa5   : > { %1098 = vmatpush1.bf16.xpose.msra.mxu0 %v1453_v21  ;;  %1179 = vmatpush1.bf16.xpose.msra.mxu1 %v1455_v28  ;;  %v1435_v21 = vcombine.low %v296_v6, %v300_v7  ;;  %v1487_v28 = vcombine.low %v346_v63, %v350_v0  ;;  %v281_v63 = vld [vmem:[%s1924_s28 + $0x90] sm:$0xff] }
  0xa6   : > { %1099 = vmatprep.subr.bf16.mxu0 %v1462_v29  ;;  %1180 = vmatprep.subr.bf16.mxu1 %v1464_v30  ;;  %v1494_v29 = vcombine.high %v353_v13, %v357_v14  ;;  %v1496_v30 = vcombine.high %v354_v15, %v358_v16  ;;  %v285_v0 = vld [vmem:[%s1924_s28 + $0xb0] sm:$0xff] }
  0xa7   : > { %975 = vmatprep.mubr.bf16.mxu0 %v1410_v31  ;;  %1056 = vmatprep.mubr.bf16.mxu1 %v1412_v23  ;;  %v1442_v31 = vcombine.high %v303_v18, %v307_v19  ;;  %v1444_v23 = vcombine.high %v304_v22, %v308_v27  ;;  %v289_v7 = vld [vmem:[%s1924_s28 + $0xd0] sm:$0xff] }
  0xac   : > { %976 = vmatmul.mubr.bf16.gmra.mrb[4].mxu0 %v1409_v33  ;;  %1057 = vmatmul.mubr.bf16.gmra.mrb[4].mxu1 %v1411_v37  ;;  %v1441_v33 = vcombine.low %v303_v18, %v307_v19  ;;  %v1443_v37 = vcombine.low %v304_v22, %v308_v27  ;;  %v302_v18 = vld [vmem:[%s1924_s28 + $0x138] sm:$0xff]  ;;  %v305_v27 = vld [vmem:[%s1924_s28 + $0x150] sm:$0xff] }
  0xad   : > { %1100 = vmatpush1.bf16.xpose.msra.mxu0 %v1461_v36  ;;  %1181 = vmatpush1.bf16.xpose.msra.mxu1 %v1463_v40  ;;  %v1493_v36 = vcombine.low %v353_v13, %v357_v14  ;;  %v1495_v40 = vcombine.low %v354_v15, %v358_v16  ;;  %v297_v15 = vld [vmem:[%s1924_s28 + $0x110] sm:$0xff] }
  0xae   : > { %1101 = vmatprep.subr.bf16.mxu0 %v1470_v41  ;;  %1182 = vmatprep.subr.bf16.mxu1 %v1472_v42  ;;  %v1502_v41 = vcombine.high %v361_v24, %v365_v25  ;;  %v1504_v42 = vcombine.high %v362_v26, %v366_v32  ;;  %v301_v16 = vld [vmem:[%s1924_s28 + $0x130] sm:$0xff] }
  0xaf   : > { %983 = vmatprep.mubr.bf16.mxu0 %v1418_v43  ;;  %1064 = vmatprep.mubr.bf16.mxu1 %v1420_v44  ;;  %v1406_v43 = vcombine.high %v265_v34, %v269_v35  ;;  %v1408_v44 = vcombine.high %v266_v38, %v270_v39 }
  0xb4   : > { %984 = vmatmul.mubr.bf16.gmra.mrb[8].mxu0 %v1417_v49  ;;  %1065 = vmatmul.mubr.bf16.gmra.mrb[8].mxu1 %v1419_v53  ;;  %v1501_v49 = vcombine.low %v361_v24, %v365_v25  ;;  %v1509_v53 = vcombine.low %v369_v45, %v373_v46 }
  0xb5   : > { %1102 = vmatpush1.bf16.xpose.msra.mxu0 %v1469_v52  ;;  %1183 = vmatpush1.bf16.xpose.msra.mxu1 %v1471_v56  ;;  %v1512_v52 = vcombine.high %v370_v47, %v374_v48  ;;  %v277_v56 = vld [vmem:[%s1924_s28 + $0x70] sm:$0xff] }
  0xb6   : > { %1103 = vmatprep.subr.bf16.mxu0 %v1478_v57  ;;  %1184 = vmatprep.subr.bf16.mxu1 %v1480_v58  ;;  %v274_v57 = vld [vmem:[%s1924_s28 + $0x58] sm:$0xff]  ;;  %v1414_v61 = vcombine.high %v273_v55, %v277_v56  ;;  %v1413_v3 = vcombine.low %v273_v55, %v277_v56 }
  0xb7   : > { %991 = vmatprep.mubr.bf16.mxu0 %v1426_v59  ;;  %1072 = vmatprep.mubr.bf16.mxu1 %v1428_v60  ;;  %v278_v58 = vld [vmem:[%s1924_s28 + $0x78] sm:$0xff]  ;;  %v1405_v59 = vcombine.low %v265_v34, %v269_v35  ;;  %v1407_v60 = vcombine.low %v266_v38, %v270_v39 }
  0xb8   : > { %v1416_v62 = vcombine.high %v274_v57, %v278_v58 }
  0xbc   : > { %992 = vmatmul.mubr.bf16.gmra.mrb[12].mxu0 %v1425_v1  ;;  %1073 = vmatmul.mubr.bf16.gmra.mrb[12].mxu1 %v1427_v5  ;;  %v282_v1 = vld [vmem:[%s1924_s28 + $0x98] sm:$0xff]  ;;  %v1422_v5 = vcombine.high %v281_v63, %v285_v0 }
  0xbd   : > { %1104 = vmatpush1.bf16.xpose.msra.mxu0 %v1477_v4  ;;  %1185 = vmatpush1.bf16.xpose.msra.mxu1 %v1479_v8  ;;  %v1415_v4 = vcombine.low %v274_v57, %v278_v58  ;;  %v1424_v6 = vcombine.high %v282_v1, %v286_v2  ;;  %v293_v8 = vld [vmem:[%s1924_s28 + $0xf0] sm:$0xff] }
  0xbe   : > { %1105 = vmatprep.subr.bf16.mxu0 %v1486_v9  ;;  %1186 = vmatprep.subr.bf16.mxu1 %v1488_v10  ;;  %v290_v9 = vld [vmem:[%s1924_s28 + $0xd8] sm:$0xff]  ;;  %v1430_v13 = vcombine.high %v289_v7, %v293_v8  ;;  %v1429_v19 = vcombine.low %v289_v7, %v293_v8 }
  0xbf   : > { %999 = vmatprep.mubr.bf16.mxu0 %v1434_v11  ;;  %1080 = vmatprep.mubr.bf16.mxu1 %v1436_v12  ;;  %v294_v10 = vld [vmem:[%s1924_s28 + $0xf8] sm:$0xff]  ;;  %v1421_v11 = vcombine.low %v281_v63, %v285_v0  ;;  %v1423_v12 = vcombine.low %v282_v1, %v286_v2 }
  0xc0   : > { %v1432_v14 = vcombine.high %v290_v9, %v294_v10 }
  0xc4   : > { %1000 = vmatmul.mubr.bf16.gmra.mrb[16].mxu0 %v1433_v17  ;;  %1081 = vmatmul.mubr.bf16.gmra.mrb[16].mxu1 %v1435_v21  ;;  %v298_v17 = vld [vmem:[%s1924_s28 + $0x118] sm:$0xff]  ;;  %v1438_v21 = vcombine.high %v297_v15, %v301_v16 }
  0xc5   : > { %1106 = vmatpush1.bf16.xpose.msra.mxu0 %v1485_v20  ;;  %1187 = vmatpush1.bf16.xpose.msra.mxu1 %v1487_v28  ;;  %v1431_v20 = vcombine.low %v290_v9, %v294_v10  ;;  %v1440_v22 = vcombine.high %v298_v17, %v302_v18  ;;  %v309_v28 = vld [vmem:[%s1924_s28 + $0x170] sm:$0x77] }
  0xc6   : > { %1107 = vmatprep.subr.bf16.mxu0 %v1494_v29  ;;  %1188 = vmatprep.subr.bf16.mxu1 %v1496_v30  ;;  %v306_v29 = vld [vmem:[%s1924_s28 + $0x158] sm:$0xff]  ;;  %v1446_v24 = vcombine.high %v305_v27, %v309_v28  ;;  %v1445_v26 = vcombine.low %v305_v27, %v309_v28 }
  0xc7   : > { %1007 = vmatprep.mubr.bf16.mxu0 %v1442_v31  ;;  %1088 = vmatprep.mubr.bf16.mxu1 %v1444_v23  ;;  %v310_v30 = vld [vmem:[%s1924_s28 + $0x178] sm:$0x77]  ;;  %v1437_v31 = vcombine.low %v297_v15, %v301_v16  ;;  %v1439_v23 = vcombine.low %v298_v17, %v302_v18 }
  0xc8   : > { %v1448_v25 = vcombine.high %v306_v29, %v310_v30  ;;  %v1447_v32 = vcombine.low %v306_v29, %v310_v30 }
  0xcc   : > { %1008 = vmatmul.mubr.bf16.gmra.mrb[20].mxu0 %v1441_v33  ;;  %1089 = vmatmul.mubr.bf16.gmra.mrb[20].mxu1 %v1443_v37 }
  0xcd   : > { %1108 = vmatpush1.bf16.xpose.msra.mxu0 %v1493_v36  ;;  %1189 = vmatpush1.bf16.xpose.msra.mxu1 %v1495_v40 }
  0xce   : > { %1109 = vmatprep.subr.bf16.mxu0 %v1502_v41  ;;  %1190 = vmatprep.subr.bf16.mxu1 %v1504_v42 }
  0xcf   : > { %1129 = vmatprep.mubr.bf16.mxu0 %v1406_v43  ;;  %1210 = vmatprep.mubr.bf16.mxu1 %v1408_v44 }
  0xd5   : > { %1110 = vmatpush1.bf16.xpose.msra.mxu0 %v1501_v49  ;;  %1191 = vmatpush1.bf16.xpose.msra.mxu1 %v1503_v50 }
  0xd6   : > { %1111 = vmatprep.subr.bf16.mxu0 %v1510_v51  ;;  %1192 = vmatprep.subr.bf16.mxu1 %v1512_v52 }
  0xdd   : > { %1112 = vmatpush1.bf16.xpose.msra.mxu0 %v1509_v53  ;;  %1193 = vmatpush1.bf16.xpose.msra.mxu1 %v1511_v54 }
  0xe4   : > { %1130 = vmatmul.mubr.bf16.vlgmr.msra.gmra.mrb[24].mxu0 %v1405_v59  ;;  %1211 = vmatmul.mubr.bf16.vlgmr.msra.gmra.mrb[24].mxu1 %v1407_v60 }
  0xe5   : > { %1137 = vmatprep.mubr.bf16.mxu0 %v1414_v61  ;;  %1218 = vmatprep.mubr.bf16.mxu1 %v1416_v62 }
  0xec   : > { %1138 = vmatmul.mubr.bf16.gmra.mrb[28].mxu0 %v1413_v3  ;;  %1219 = vmatmul.mubr.bf16.gmra.mrb[28].mxu1 %v1415_v4 }
  0xed   : > { %1145 = vmatprep.mubr.bf16.mxu0 %v1422_v5  ;;  %1226 = vmatprep.mubr.bf16.mxu1 %v1424_v6 }
  0xf4   : > { %1146 = vmatmul.mubr.bf16.gmra.mrb[32].mxu0 %v1421_v11  ;;  %1227 = vmatmul.mubr.bf16.gmra.mrb[32].mxu1 %v1423_v12 }
  0xf5   : > { %1153 = vmatprep.mubr.bf16.mxu0 %v1430_v13  ;;  %1234 = vmatprep.mubr.bf16.mxu1 %v1432_v14 }
  0xfc   : > { %1154 = vmatmul.mubr.bf16.gmra.mrb[36].mxu0 %v1429_v19  ;;  %1235 = vmatmul.mubr.bf16.gmra.mrb[36].mxu1 %v1431_v20 }
  0xfd   : > { %1161 = vmatprep.mubr.bf16.mxu0 %v1438_v21  ;;  %1242 = vmatprep.mubr.bf16.mxu1 %v1440_v22 }
 0x104   : > { %1162 = vmatmul.mubr.bf16.gmra.mrb[40].mxu0 %v1437_v31  ;;  %1243 = vmatmul.mubr.bf16.gmra.mrb[40].mxu1 %v1439_v23 }
 0x105   : > { %1169 = vmatprep.mubr.bf16.mxu0 %v1446_v24  ;;  %1250 = vmatprep.mubr.bf16.mxu1 %v1448_v25 }
 0x10c   : > { %1170 = vmatmul.mubr.bf16.gmra.mrb[44].mxu0 %v1445_v26  ;;  %1251 = vmatmul.mubr.bf16.gmra.mrb[44].mxu1 %v1447_v32 }
 0x177   : > { %v969_v33 = vpop.f32.mrb[0].mxu0  ;;  %v1050_v34 = vpop.f32.mrb[0].mxu1 }
 0x178   : > { %v971_v35 = vpop.f32.mrb[1].mxu0  ;;  %v1051_v36 = vadd.f32 %v1050_v34, %v969_v33  ;;  %v1052_v37 = vpop.f32.mrb[1].mxu1  ;;  %v251_v33 = vld [vmem:[%s1941_s29] sm:$0xff] }
 0x179   : > { %v972_v38 = vpop.f32.mrb[2].mxu0  ;;  %v1053_v39 = vpop.f32.mrb[2].mxu1 }
 0x17a   : > { %v974_v40 = vpop.f32.mrb[3].mxu0  ;;  %v1054_v41 = vadd.f32 %v1053_v39, %v972_v38  ;;  %v1055_v42 = vpop.f32.mrb[3].mxu1 }
 0x17b   : > { %v252_v42 = vld [vmem:[%s1941_s29 + $0x8] sm:$0xff] }
 0x17f   : > { %v977_v43 = vpop.f32.mrb[4].mxu0  ;;  %v1058_v45 = vpop.f32.mrb[4].mxu1 }
 0x180   : > { %v979_v44 = vpop.f32.mrb[5].mxu0  ;;  %v2084_v46 = vadd.f32 %v1058_v45, %v977_v43  ;;  %v1060_v48 = vpop.f32.mrb[5].mxu1 }
 0x181   : > { %v980_v47 = vpop.f32.mrb[6].mxu0  ;;  %v1061_v50 = vpop.f32.mrb[6].mxu1 }
 0x182   : > { %v982_v49 = vpop.f32.mrb[7].mxu0  ;;  %v2086_v51 = vadd.f32 %v1061_v50, %v980_v47  ;;  %v1063_v52 = vpop.f32.mrb[7].mxu1 }
 0x183   : > { %v253_v52 = vld [vmem:[%s1941_s29 + $0x10] sm:$0xff] }
 0x187   : > { %v985_v53 = vpop.f32.mrb[8].mxu0  ;;  %v1066_v55 = vpop.f32.mrb[8].mxu1 }
 0x188   : > { %v987_v54 = vpop.f32.mrb[9].mxu0  ;;  %v2088_v56 = vadd.f32 %v1066_v55, %v985_v53  ;;  %v1068_v58 = vpop.f32.mrb[9].mxu1 }
 0x189   : > { %v988_v57 = vpop.f32.mrb[10].mxu0  ;;  %v1069_v60 = vpop.f32.mrb[10].mxu1 }
 0x18a   : > { %v990_v59 = vpop.f32.mrb[11].mxu0  ;;  %v2090_v61 = vadd.f32 %v1069_v60, %v988_v57  ;;  %v1071_v62 = vpop.f32.mrb[11].mxu1 }
 0x18b   : > { %v254_v59 = vld [vmem:[%s1941_s29 + $0x18] sm:$0xff] }
 0x18f   : > { %v993_v63 = vpop.f32.mrb[12].mxu0  ;;  %v1074_v1 = vpop.f32.mrb[12].mxu1 }
 0x190   : > { %v995_v0 = vpop.f32.mrb[13].mxu0  ;;  %v2092_v2 = vadd.f32 %v1074_v1, %v993_v63  ;;  %v1076_v4 = vpop.f32.mrb[13].mxu1 }
 0x191   : > { %v996_v3 = vpop.f32.mrb[14].mxu0  ;;  %v1077_v6 = vpop.f32.mrb[14].mxu1 }
 0x192   : > { %v998_v5 = vpop.f32.mrb[15].mxu0  ;;  %v2094_v7 = vadd.f32 %v1077_v6, %v996_v3  ;;  %v1079_v8 = vpop.f32.mrb[15].mxu1 }
 0x193   : > { %v255_v5 = vld [vmem:[%s1941_s29 + $0x20] sm:$0xff] }
 0x197   : > { %v1001_v9 = vpop.f32.mrb[16].mxu0  ;;  %v1082_v11 = vpop.f32.mrb[16].mxu1 }
 0x198   : > { %v1003_v10 = vpop.f32.mrb[17].mxu0  ;;  %v2096_v12 = vadd.f32 %v1082_v11, %v1001_v9  ;;  %v1084_v14 = vpop.f32.mrb[17].mxu1 }
 0x199   : > { %v1004_v13 = vpop.f32.mrb[18].mxu0  ;;  %v1085_v16 = vpop.f32.mrb[18].mxu1 }
 0x19a   : > { %v1006_v15 = vpop.f32.mrb[19].mxu0  ;;  %v2098_v17 = vadd.f32 %v1085_v16, %v1004_v13  ;;  %v1087_v18 = vpop.f32.mrb[19].mxu1  ;;  %v256_v13 = vld [vmem:[%s1941_s29 + $0x28] sm:$0xff] }
 0x19f   : > { %v1009_v19 = vpop.f32.mrb[20].mxu0  ;;  %v1090_v21 = vpop.f32.mrb[20].mxu1 }
 0x1a0   : > { %v1011_v20 = vpop.f32.mrb[21].mxu0  ;;  %v2100_v22 = vadd.f32 %v1090_v21, %v1009_v19  ;;  %v1092_v28 = vpop.f32.mrb[21].mxu1 }
 0x1a1   : > { %v1012_v27 = vpop.f32.mrb[22].mxu0  ;;  %v1093_v30 = vpop.f32.mrb[22].mxu1 }
 0x1a2   : > { %v1014_v29 = vpop.f32.mrb[23].mxu0  ;;  %v2102_v31 = vadd.f32 %v1093_v30, %v1012_v27  ;;  %v1095_v23 = vpop.f32.mrb[23].mxu1  ;;  %v257_v27 = vld [vmem:[%s1941_s29 + $0x30] sm:$0xff] }
 0x1b7   : > { %v1131_v24 = vpop.f32.mrb[24].mxu0  ;;  %v1212_v26 = vpop.f32.mrb[24].mxu1 }
 0x1b8   : > { %v1132_v25 = vadd.f32 %v1131_v24, %v1051_v36  ;;  %v1133_v32 = vpop.f32.mrb[25].mxu0  ;;  %v1214_v34 = vpop.f32.mrb[25].mxu1 }
 0x1b9   : > { %v1134_v35 = vpop.f32.mrb[26].mxu0  ;;  %v1215_v39 = vpop.f32.mrb[26].mxu1 }
 0x1ba   : > { %v1213_v37 = vadd.f32 %v1212_v26, %v1132_v25  ;;  %v1135_v38 = vadd.f32 %v1134_v35, %v1054_v41  ;;  %v1136_v40 = vpop.f32.mrb[27].mxu0  ;;  %v1217_v43 = vpop.f32.mrb[27].mxu1  ;;  %v258_v25 = vld [vmem:[%s1941_s29 + $0x38] sm:$0xff] }
 0x1bc   : > { %v1259_v44 = vadd.f32 %v1213_v37, %v251_v33  ;;  %v1216_v45 = vadd.f32 %v1215_v39, %v1135_v38  ;;  %v259_v39 = vld [vmem:[%s1941_s29 + $0x40] sm:$0xff] }
 0x1be   : > { %1271 = vst [vmem:[%s1941_s29] sm:$0xff] %v1259_v44  ;;  %v1260_v47 = vadd.f32 %v1216_v45, %v252_v42 }
 0x1bf   : > { %v1139_v48 = vpop.f32.mrb[28].mxu0  ;;  %v1220_v49 = vpop.f32.mrb[28].mxu1 }
 0x1c0   : > { %1272 = vst [vmem:[%s1941_s29 + $0x8] sm:$0xff] %v1260_v47  ;;  %v1140_v36 = vadd.f32 %v1139_v48, %v2084_v46  ;;  %v1141_v50 = vpop.f32.mrb[29].mxu0  ;;  %v1222_v53 = vpop.f32.mrb[29].mxu1  ;;  %v260_v47 = vld [vmem:[%s1941_s29 + $0x48] sm:$0xff] }
 0x1c1   : > { %v1142_v41 = vpop.f32.mrb[30].mxu0  ;;  %v1223_v57 = vpop.f32.mrb[30].mxu1 }
 0x1c2   : > { %v1221_v54 = vadd.f32 %v1220_v49, %v1140_v36  ;;  %v1143_v55 = vadd.f32 %v1142_v41, %v2086_v51  ;;  %v1144_v58 = vpop.f32.mrb[31].mxu0  ;;  %v1225_v60 = vpop.f32.mrb[31].mxu1 }
 0x1c4   : > { %v1261_v62 = vadd.f32 %v1221_v54, %v253_v52  ;;  %v1224_v63 = vadd.f32 %v1223_v57, %v1143_v55  ;;  %v261_v54 = vld [vmem:[%s1941_s29 + $0x50] sm:$0xff] }
 0x1c6   : > { %1273 = vst [vmem:[%s1941_s29 + $0x10] sm:$0xff] %v1261_v62  ;;  %v1262_v0 = vadd.f32 %v1224_v63, %v254_v59  ;;  %v262_v62 = vld [vmem:[%s1941_s29 + $0x58] sm:$0x3f] }
 0x1c7   : > { %v1147_v46 = vpop.f32.mrb[32].mxu0  ;;  %v1228_v3 = vpop.f32.mrb[32].mxu1 }
 0x1c8   : > { %1274 = vst [vmem:[%s1941_s29 + $0x18] sm:$0xff] %v1262_v0  ;;  %v1148_v1 = vadd.f32 %v1147_v46, %v2088_v56  ;;  %v1149_v4 = vpop.f32.mrb[33].mxu0  ;;  %v1230_v6 = vpop.f32.mrb[33].mxu1 }
 0x1c9   : > { %v1150_v51 = vpop.f32.mrb[34].mxu0  ;;  %v1231_v10 = vpop.f32.mrb[34].mxu1 }
 0x1ca   : > { %v1229_v8 = vadd.f32 %v1228_v3, %v1148_v1  ;;  %v1151_v9 = vadd.f32 %v1150_v51, %v2090_v61  ;;  %v1152_v11 = vpop.f32.mrb[35].mxu0  ;;  %v1233_v14 = vpop.f32.mrb[35].mxu1 }
 0x1cc   : > { %v1263_v15 = vadd.f32 %v1229_v8, %v255_v5  ;;  %v1232_v16 = vadd.f32 %v1231_v10, %v1151_v9 }
 0x1ce   : > { %1275 = vst [vmem:[%s1941_s29 + $0x20] sm:$0xff] %v1263_v15  ;;  %v1264_v18 = vadd.f32 %v1232_v16, %v256_v13 }
 0x1cf   : > { %v1155_v56 = vpop.f32.mrb[36].mxu0  ;;  %v1236_v20 = vpop.f32.mrb[36].mxu1 }
 0x1d0   : > { %1276 = vst [vmem:[%s1941_s29 + $0x28] sm:$0xff] %v1264_v18  ;;  %v1156_v19 = vadd.f32 %v1155_v56, %v2092_v2  ;;  %v1157_v21 = vpop.f32.mrb[37].mxu0  ;;  %v1238_v28 = vpop.f32.mrb[37].mxu1 }
 0x1d1   : > { %v1158_v61 = vpop.f32.mrb[38].mxu0  ;;  %v1239_v23 = vpop.f32.mrb[38].mxu1 }
 0x1d2   : > { %v1237_v29 = vadd.f32 %v1236_v20, %v1156_v19  ;;  %v1159_v30 = vadd.f32 %v1158_v61, %v2094_v7  ;;  %v1160_v24 = vpop.f32.mrb[39].mxu0  ;;  %v1241_v26 = vpop.f32.mrb[39].mxu1 }
 0x1d4   : > { %v1265_v32 = vadd.f32 %v1237_v29, %v257_v27  ;;  %v1240_v33 = vadd.f32 %v1239_v23, %v1159_v30 }
 0x1d6   : > { %1277 = vst [vmem:[%s1941_s29 + $0x30] sm:$0xff] %v1265_v32  ;;  %v1266_v34 = vadd.f32 %v1240_v33, %v258_v25 }
 0x1d7   : > { %v1163_v2 = vpop.f32.mrb[40].mxu0  ;;  %v1244_v37 = vpop.f32.mrb[40].mxu1 }
 0x1d8   : > { %1278 = vst [vmem:[%s1941_s29 + $0x38] sm:$0xff] %v1266_v34  ;;  %v1164_v35 = vadd.f32 %v1163_v2, %v2096_v12  ;;  %v1165_v38 = vpop.f32.mrb[41].mxu0  ;;  %v1246_v40 = vpop.f32.mrb[41].mxu1 }
 0x1d9   : > { %v1166_v7 = vpop.f32.mrb[42].mxu0  ;;  %v1247_v44 = vpop.f32.mrb[42].mxu1 }
 0x1da   : > { %v1245_v42 = vadd.f32 %v1244_v37, %v1164_v35  ;;  %v1167_v43 = vadd.f32 %v1166_v7, %v2098_v17  ;;  %v1168_v45 = vpop.f32.mrb[43].mxu0  ;;  %v1249_v48 = vpop.f32.mrb[43].mxu1 }
 0x1dc   : > { %v1267_v36 = vadd.f32 %v1245_v42, %v259_v39  ;;  %v1248_v49 = vadd.f32 %v1247_v44, %v1167_v43 }
 0x1de   : > { %1279 = vst [vmem:[%s1941_s29 + $0x40] sm:$0xff] %v1267_v36  ;;  %v1268_v50 = vadd.f32 %v1248_v49, %v260_v47 }
 0x1df   : > { %v1171_v12 = vpop.f32.mrb[44].mxu0  ;;  %v1252_v53 = vpop.f32.mrb[44].mxu1 }
 0x1e0   : > { %1280 = vst [vmem:[%s1941_s29 + $0x48] sm:$0xff] %v1268_v50  ;;  %v1172_v52 = vadd.f32 %v1171_v12, %v2100_v22  ;;  %v1173_v41 = vpop.f32.mrb[45].mxu0  ;;  %v1254_v55 = vpop.f32.mrb[45].mxu1 }
 0x1e1   : > { %v1174_v17 = vpop.f32.mrb[46].mxu0  ;;  %v1255_v59 = vpop.f32.mrb[46].mxu1 }
 0x1e2   : > { %v1253_v57 = vadd.f32 %v1252_v53, %v1172_v52  ;;  %v1175_v58 = vadd.f32 %v1174_v17, %v2102_v31  ;;  %v1176_v60 = vpop.f32.mrb[47].mxu0  ;;  %v1257_v63 = vpop.f32.mrb[47].mxu1 }
 0x1e4   : > { %v1269_v0 = vadd.f32 %v1253_v57, %v261_v54  ;;  %v1256_v46 = vadd.f32 %v1255_v59, %v1175_v58 }
 0x1e6   : > { %1281 = vst [vmem:[%s1941_s29 + $0x50] sm:$0xff] %v1269_v0  ;;  %v1270_v1 = vadd.f32 %v1256_v46, %v262_v62 }
 0x1e8   : > { %1282 = vst [vmem:[%s1941_s29 + $0x58] sm:$0x3f] %v1270_v1 }
 0x1e9 PF: > { %s18_s16 = sadd.s32 1, %s1730_s16   ;;  %s2172_s9 = smov %s1706_s10 }
 0x1ea   : > { %p15_p5 = scmp.ge.s32.totalorder %s18_s16, 8   ;;  %s2173_s10 = smov %s1710_s11 }
 0x1eb   : > { %s2174_s11 = smov %s1833_s6  ;;  %s2175_s12 = smov %s1722_s14 }
 0x1ec   : > { %s2176_s13 = smov %s1726_s15  ;;  %s2177_s14 = smov %s2180_s18 }
 0x1ed   : > { %s2178_s15 = smov %s2184_s19  ;;  %17 = sbr.rel (!%p15_p5) target bundleno = 7 (0x7), region = 85 }
 0x1f4   :  { %1304 = vsyncpa [#allocation3], 1 }
 0x1f5   :  { %1306 = vsyncpa [#allocation3 + $0x1], 1 }
 0x1f6   :  { %1307 = vsyncpa [#allocation5], 1 }
 0x1f7   :  { %1309 = vsyncpa [#allocation5 + $0x1], 1 }

</bundles_post_ra>
